<compile_context>
chip_gen: v7x
topology: tpu7x:2x2x1
jax: 0.10.0
libtpu: 0.0.40
codegen_flags: <defaults>
</compile_context>

<pallas_src>
import functools

import jax
import jax.numpy as jnp
from jax.experimental import pallas as pl
from jax.experimental.pallas import tpu as pltpu


def _round_up(n, m):
    return ((n + m - 1) // m) * m


def boltznet_kernel(x_ref, w1_ref, b1_ref, w2_ref, b2_ref,
                    w3_ref, b3_ref, w4_ref, b4_ref, o_ref):
    cdt = w1_ref.dtype  # MXU operand dtype (bf16); accumulate in f32.
    x = x_ref[...].astype(cdt)

    h = jnp.dot(x, w1_ref[...], preferred_element_type=jnp.float32) + b1_ref[...]
    h = jnp.maximum(h, 0.0)                                        # ReLU (f32, VPU)

    h = jnp.dot(h.astype(cdt), w2_ref[...],
                preferred_element_type=jnp.float32) + b2_ref[...]
    h = jnp.tanh(h)                                                # Tanh (f32, EUP)

    h = jnp.dot(h.astype(cdt), w3_ref[...],
                preferred_element_type=jnp.float32) + b3_ref[...]
    h = jnp.tanh(h)

    out = jnp.dot(h.astype(cdt), w4_ref[...],
                  preferred_element_type=jnp.float32) + b4_ref[...]
    o_ref[...] = out.astype(o_ref.dtype)


def init_params(key, d_in, nhidden, d_out):
    """PyTorch-style Linear init; weights stored (in, out), biases (1, out)."""
    ks = jax.random.split(key, 8)

    def lin(kw, kb, fan_in, fan_out):
        bound = 1.0 / jnp.sqrt(jnp.float32(fan_in))
        w = jax.random.uniform(kw, (fan_in, fan_out), jnp.float32, -bound, bound)
        b = jax.random.uniform(kb, (1, fan_out), jnp.float32, -bound, bound)
        return w, b

    w1, b1 = lin(ks[0], ks[1], d_in, nhidden)
    w2, b2 = lin(ks[2], ks[3], nhidden, nhidden)
    w3, b3 = lin(ks[4], ks[5], nhidden, nhidden)
    w4, b4 = lin(ks[6], ks[7], nhidden, d_out)
    return dict(w1=w1, b1=b1, w2=w2, b2=b2, w3=w3, b3=b3, w4=w4, b4=b4)


def prepare_params_for_tpu(params, weights_dtype=jnp.bfloat16):
    """Zero-pad H/d_out to multiples of 128 (lane-dense stores) and d_in to 8,
    cast weights to bf16 (biases stay f32).  Padding is exact: padded hidden
    units stay 0 through ReLU/tanh; padded output columns are sliced off."""
    w1, w2, w3, w4 = params["w1"], params["w2"], params["w3"], params["w4"]
    b1, b2, b3, b4 = params["b1"], params["b2"], params["b3"], params["b4"]
    d_in, H = w1.shape
    d_out = w4.shape[1]
    d_in_p = _round_up(d_in, 8)
    H_p = _round_up(H, 128)
    d_out_p = _round_up(d_out, 128)

    def pad2(a, r, c):
        return jnp.pad(a, ((0, r - a.shape[0]), (0, c - a.shape[1])))

    tpu_params = dict(
        w1=pad2(w1, d_in_p, H_p).astype(weights_dtype),   b1=pad2(b1, 1, H_p),
        w2=pad2(w2, H_p, H_p).astype(weights_dtype),      b2=pad2(b2, 1, H_p),
        w3=pad2(w3, H_p, H_p).astype(weights_dtype),      b3=pad2(b3, 1, H_p),
        w4=pad2(w4, H_p, d_out_p).astype(weights_dtype),  b4=pad2(b4, 1, d_out_p),
    )
    return tpu_params, d_out


@functools.partial(
    jax.jit, static_argnames=("orig_d_out", "tile_b", "single_buffer_weights"))
def boltznet_forward(x, tpu_params, orig_d_out, tile_b=None,
                     single_buffer_weights=True):
    """x: (B, d_in) float32 -> (B, orig_d_out) float32."""
    p = tpu_params
    B, d_in = x.shape
    d_in_p, H_p = p["w1"].shape
    d_out_p = p["w4"].shape[1]

    # One grid step for small batches (no pipeline overhead); 256-row tiles
    # (MXU-sized, >=2 tiles so both v7x TensorCores get work) for large B.
    if tile_b is None:
        tile_b = _round_up(B, 8) if B <= 256 else 256
    B_p = _round_up(B, tile_b)
    if (B_p, d_in_p) != (B, d_in):
        x = jnp.pad(x, ((0, B_p - B), (0, d_in_p - d_in)))
    grid = (B_p // tile_b,)

    def w_spec(shape):
        # Grid-invariant weights/biases: constant index_map; single-buffer them
        # so we don't waste VMEM on a second copy that is never refreshed.
        if single_buffer_weights:
            return pl.BlockSpec(shape, lambda i: (0, 0),
                                pipeline_mode=pl.Buffered(1))
        return pl.BlockSpec(shape, lambda i: (0, 0))

    # VMEM budget: weights/biases x buffer count + double-buffered x/out tiles
    # + live f32 intermediates, with 2x headroom (capped).  Sized explicitly so
    # large H/d_out configs stay under v7x's 64 MiB physical VMEM.
    wb = jnp.dtype(p["w1"].dtype).itemsize
    n_wbuf = 1 if single_buffer_weights else 2
    est = ((d_in_p * H_p + 2 * H_p * H_p + H_p * d_out_p) * wb * n_wbuf
           + (3 * H_p + d_out_p) * 4 * n_wbuf
           + tile_b * d_in_p * 4 * 2
           + tile_b * d_out_p * 4 * 2
           + tile_b * H_p * 4 * 4)
    vmem_limit = int(min(max(32 * 1024 * 1024, 2 * est), 100 * 1024 * 1024))

    out_p = pl.pallas_call(
        boltznet_kernel,
        out_shape=jax.ShapeDtypeStruct((B_p, d_out_p), jnp.float32),
        grid_spec=pltpu.PrefetchScalarGridSpec(
            num_scalar_prefetch=0,
            grid=grid,
            in_specs=[
                pl.BlockSpec((tile_b, d_in_p), lambda i: (i, 0)),   # x tile
                w_spec((d_in_p, H_p)),  w_spec((1, H_p)),           # layer 1
                w_spec((H_p, H_p)),     w_spec((1, H_p)),           # layer 2
                w_spec((H_p, H_p)),     w_spec((1, H_p)),           # layer 3
                w_spec((H_p, d_out_p)), w_spec((1, d_out_p)),       # out layer
            ],
            out_specs=pl.BlockSpec((tile_b, d_out_p), lambda i: (i, 0)),
        ),
        compiler_params=pltpu.CompilerParams(
            dimension_semantics=("parallel",),
            vmem_limit_bytes=vmem_limit),
    )(x, p["w1"], p["b1"], p["w2"], p["b2"], p["w3"], p["b3"], p["w4"], p["b4"])

    return out_p[:B, :orig_d_out]


def reference_forward(x, tpu_params, orig_d_out):
    """Pure-JAX reference using the same padded bf16 weights / f32 math."""
    p = tpu_params
    cdt = p["w1"].dtype
    x = jnp.pad(x, ((0, 0), (0, p["w1"].shape[0] - x.shape[1]))).astype(cdt)
    h = jnp.maximum(
        jnp.dot(x, p["w1"], preferred_element_type=jnp.float32) + p["b1"], 0.0)
    h = jnp.tanh(
        jnp.dot(h.astype(cdt), p["w2"], preferred_element_type=jnp.float32) + p["b2"])
    h = jnp.tanh(
        jnp.dot(h.astype(cdt), p["w3"], preferred_element_type=jnp.float32) + p["b3"])
    out = jnp.dot(h.astype(cdt), p["w4"],
                  preferred_element_type=jnp.float32) + p["b4"]
    return out[:, :orig_d_out]


if __name__ == "__main__":
    # Small shapes consistent with the module: d_in=5 cosmological params,
    # hidden width / output power-spectrum length scaled down from 1000/500.
    # nhidden/d_out deliberately NOT multiples of 128 to exercise the padding.
    B, d_in, nhidden, d_out = 16, 5, 100, 120

    key = jax.random.PRNGKey(0)
    k_x, k_p = jax.random.split(key)
    params = init_params(k_p, d_in, nhidden, d_out)
    tpu_params, out_dim = prepare_params_for_tpu(params)

    # Inputs inside the module's prior bounds, log-transformed as in
    # BoltzNet.transform (log_it=True, loc=0, scale=1).
    lower = jnp.array([0.1, 0.03, 0.5, 0.8, 0.6], jnp.float32)
    upper = jnp.array([0.5, 0.07, 0.9, 1.2, 1.0], jnp.float32)
    u = jax.random.uniform(k_x, (B, d_in), jnp.float32)
    x = jnp.log(lower + u * (upper - lower))

    try:
        y = jax.block_until_ready(
            boltznet_forward(x, tpu_params, orig_d_out=out_dim))
    except Exception:
        # Fallback if this JAX version rejects pipeline_mode=pl.Buffered(1).
        y = jax.block_until_ready(
            boltznet_forward(x, tpu_params, orig_d_out=out_dim,
                             single_buffer_weights=False))

    y_ref = reference_forward(x, tpu_params, out_dim)
    assert y.shape == (B, d_out)
    assert jnp.allclose(y, y_ref, atol=1e-2, rtol=1e-2), "mismatch vs reference"

    # TODO(synk): interp() (SciPy InterpolatedUnivariateSpline) and the numpy
    # transform/inv_transform/check_bounds/save/load helpers are host-side glue
    # with no Pallas equivalent; only the nn.Module forward runs in-kernel.
    print("KERNEL_OK")
</pallas_src>

<mosaic_0001>
module attributes {stable_mosaic.version = 11 : i64} {
  func.func @boltznet_kernel(%arg0: i32, %arg1: memref<16x8xf32, #tpu.memory_space<vmem>>, %arg2: memref<8x128xbf16, #tpu.memory_space<vmem>>, %arg3: memref<1x128xf32, #tpu.memory_space<vmem>>, %arg4: memref<128x128xbf16, #tpu.memory_space<vmem>>, %arg5: memref<1x128xf32, #tpu.memory_space<vmem>>, %arg6: memref<128x128xbf16, #tpu.memory_space<vmem>>, %arg7: memref<1x128xf32, #tpu.memory_space<vmem>>, %arg8: memref<128x128xbf16, #tpu.memory_space<vmem>>, %arg9: memref<1x128xf32, #tpu.memory_space<vmem>>, %arg10: memref<16x128xf32, #tpu.memory_space<vmem>>) attributes {dimension_semantics = [#tpu.dimension_semantics<parallel>], iteration_bounds = array<i64: 1>, scalar_prefetch = 0 : i64, scratch_operands = 0 : i64, tpu.core_type = #tpu.core_type<tc>, window_params = [{transform_indices = @transform_0, window_bounds = array<i64: 16, 8>}, {pipeline_mode = #tpu.pipeline_mode<synchronous>, transform_indices = @transform_1, window_bounds = array<i64: 8, 128>}, {pipeline_mode = #tpu.pipeline_mode<synchronous>, transform_indices = @transform_2, window_bounds = array<i64: 1, 128>}, {pipeline_mode = #tpu.pipeline_mode<synchronous>, transform_indices = @transform_3, window_bounds = array<i64: 128, 128>}, {pipeline_mode = #tpu.pipeline_mode<synchronous>, transform_indices = @transform_4, window_bounds = array<i64: 1, 128>}, {pipeline_mode = #tpu.pipeline_mode<synchronous>, transform_indices = @transform_5, window_bounds = array<i64: 128, 128>}, {pipeline_mode = #tpu.pipeline_mode<synchronous>, transform_indices = @transform_6, window_bounds = array<i64: 1, 128>}, {pipeline_mode = #tpu.pipeline_mode<synchronous>, transform_indices = @transform_7, window_bounds = array<i64: 128, 128>}, {pipeline_mode = #tpu.pipeline_mode<synchronous>, transform_indices = @transform_8, window_bounds = array<i64: 1, 128>}, {transform_indices = @transform_9, window_bounds = array<i64: 16, 128>}]} {
    %c0 = arith.constant 0 : index
    %c0_0 = arith.constant 0 : index
    %0 = vector.load %arg1[%c0, %c0_0] : memref<16x8xf32, #tpu.memory_space<vmem>>, vector<16x8xf32>
    %1 = arith.truncf %0 : vector<16x8xf32> to vector<16x8xbf16>
    %c0_1 = arith.constant 0 : index
    %c0_2 = arith.constant 0 : index
    %2 = vector.load %arg2[%c0_1, %c0_2] : memref<8x128xbf16, #tpu.memory_space<vmem>>, vector<8x128xbf16>
    %cst = arith.constant dense<0.000000e+00> : vector<16x128xf32>
    %3 = tpu.matmul %1, %2, %cst {dimension_numbers = #tpu.dot_dimension_numbers<[1], [0], [0], [1], [0, 0, 1, 1], [], []>} : vector<16x8xbf16>, vector<8x128xbf16>, vector<16x128xf32> -> vector<16x128xf32>
    %c0_3 = arith.constant 0 : index
    %c0_4 = arith.constant 0 : index
    %4 = vector.load %arg3[%c0_3, %c0_4] : memref<1x128xf32, #tpu.memory_space<vmem>>, vector<1x128xf32>
    %5 = vector.broadcast %4 : vector<1x128xf32> to vector<16x128xf32>
    %6 = arith.addf %3, %5 : vector<16x128xf32>
    %cst_5 = arith.constant 0.000000e+00 : f32
    %7 = vector.broadcast %cst_5 : f32 to vector<16x128xf32>
    %8 = arith.maximumf %6, %7 : vector<16x128xf32>
    %9 = arith.truncf %8 : vector<16x128xf32> to vector<16x128xbf16>
    %c0_6 = arith.constant 0 : index
    %c0_7 = arith.constant 0 : index
    %10 = vector.load %arg4[%c0_6, %c0_7] : memref<128x128xbf16, #tpu.memory_space<vmem>>, vector<128x128xbf16>
    %cst_8 = arith.constant dense<0.000000e+00> : vector<16x128xf32>
    %11 = tpu.matmul %9, %10, %cst_8 {dimension_numbers = #tpu.dot_dimension_numbers<[1], [0], [0], [1], [0, 0, 1, 1], [], []>} : vector<16x128xbf16>, vector<128x128xbf16>, vector<16x128xf32> -> vector<16x128xf32>
    %c0_9 = arith.constant 0 : index
    %c0_10 = arith.constant 0 : index
    %12 = vector.load %arg5[%c0_9, %c0_10] : memref<1x128xf32, #tpu.memory_space<vmem>>, vector<1x128xf32>
    %13 = vector.broadcast %12 : vector<1x128xf32> to vector<16x128xf32>
    %14 = arith.addf %11, %13 : vector<16x128xf32>
    %15 = math.tanh %14 : vector<16x128xf32>
    %16 = arith.truncf %15 : vector<16x128xf32> to vector<16x128xbf16>
    %c0_11 = arith.constant 0 : index
    %c0_12 = arith.constant 0 : index
    %17 = vector.load %arg6[%c0_11, %c0_12] : memref<128x128xbf16, #tpu.memory_space<vmem>>, vector<128x128xbf16>
    %cst_13 = arith.constant dense<0.000000e+00> : vector<16x128xf32>
    %18 = tpu.matmul %16, %17, %cst_13 {dimension_numbers = #tpu.dot_dimension_numbers<[1], [0], [0], [1], [0, 0, 1, 1], [], []>} : vector<16x128xbf16>, vector<128x128xbf16>, vector<16x128xf32> -> vector<16x128xf32>
    %c0_14 = arith.constant 0 : index
    %c0_15 = arith.constant 0 : index
    %19 = vector.load %arg7[%c0_14, %c0_15] : memref<1x128xf32, #tpu.memory_space<vmem>>, vector<1x128xf32>
    %20 = vector.broadcast %19 : vector<1x128xf32> to vector<16x128xf32>
    %21 = arith.addf %18, %20 : vector<16x128xf32>
    %22 = math.tanh %21 : vector<16x128xf32>
    %23 = arith.truncf %22 : vector<16x128xf32> to vector<16x128xbf16>
    %c0_16 = arith.constant 0 : index
    %c0_17 = arith.constant 0 : index
    %24 = vector.load %arg8[%c0_16, %c0_17] : memref<128x128xbf16, #tpu.memory_space<vmem>>, vector<128x128xbf16>
    %cst_18 = arith.constant dense<0.000000e+00> : vector<16x128xf32>
    %25 = tpu.matmul %23, %24, %cst_18 {dimension_numbers = #tpu.dot_dimension_numbers<[1], [0], [0], [1], [0, 0, 1, 1], [], []>} : vector<16x128xbf16>, vector<128x128xbf16>, vector<16x128xf32> -> vector<16x128xf32>
    %c0_19 = arith.constant 0 : index
    %c0_20 = arith.constant 0 : index
    %26 = vector.load %arg9[%c0_19, %c0_20] : memref<1x128xf32, #tpu.memory_space<vmem>>, vector<1x128xf32>
    %27 = vector.broadcast %26 : vector<1x128xf32> to vector<16x128xf32>
    %28 = arith.addf %25, %27 : vector<16x128xf32>
    %c0_21 = arith.constant 0 : index
    %c0_22 = arith.constant 0 : index
    %29 = vector.load %arg10[%c0_21, %c0_22] : memref<16x128xf32, #tpu.memory_space<vmem>>, vector<16x128xf32>
    tpu.vector_store %arg10[%c0_21, %c0_22], %28 {strides = array<i32>} : memref<16x128xf32, #tpu.memory_space<vmem>>, vector<16x128xf32>,
    return
  }
  func.func @transform_0(%arg0: i32) -> (i32, i32) {
    %c0_i32 = arith.constant 0 : i32
    %c0_i32_0 = arith.constant 0 : i32
    return %arg0, %c0_i32 : i32, i32
  }
  func.func @transform_1(%arg0: i32) -> (i32, i32) {
    %c0_i32 = arith.constant 0 : i32
    %c0_i32_0 = arith.constant 0 : i32
    %c0_i32_1 = arith.constant 0 : i32
    return %c0_i32, %c0_i32_0 : i32, i32
  }
  func.func @transform_2(%arg0: i32) -> (i32, i32) {
    %c0_i32 = arith.constant 0 : i32
    %c0_i32_0 = arith.constant 0 : i32
    %c0_i32_1 = arith.constant 0 : i32
    return %c0_i32, %c0_i32_0 : i32, i32
  }
  func.func @transform_3(%arg0: i32) -> (i32, i32) {
    %c0_i32 = arith.constant 0 : i32
    %c0_i32_0 = arith.constant 0 : i32
    %c0_i32_1 = arith.constant 0 : i32
    return %c0_i32, %c0_i32_0 : i32, i32
  }
  func.func @transform_4(%arg0: i32) -> (i32, i32) {
    %c0_i32 = arith.constant 0 : i32
    %c0_i32_0 = arith.constant 0 : i32
    %c0_i32_1 = arith.constant 0 : i32
    return %c0_i32, %c0_i32_0 : i32, i32
  }
  func.func @transform_5(%arg0: i32) -> (i32, i32) {
    %c0_i32 = arith.constant 0 : i32
    %c0_i32_0 = arith.constant 0 : i32
    %c0_i32_1 = arith.constant 0 : i32
    return %c0_i32, %c0_i32_0 : i32, i32
  }
  func.func @transform_6(%arg0: i32) -> (i32, i32) {
    %c0_i32 = arith.constant 0 : i32
    %c0_i32_0 = arith.constant 0 : i32
    %c0_i32_1 = arith.constant 0 : i32
    return %c0_i32, %c0_i32_0 : i32, i32
  }
  func.func @transform_7(%arg0: i32) -> (i32, i32) {
    %c0_i32 = arith.constant 0 : i32
    %c0_i32_0 = arith.constant 0 : i32
    %c0_i32_1 = arith.constant 0 : i32
    return %c0_i32, %c0_i32_0 : i32, i32
  }
  func.func @transform_8(%arg0: i32) -> (i32, i32) {
    %c0_i32 = arith.constant 0 : i32
    %c0_i32_0 = arith.constant 0 : i32
    %c0_i32_1 = arith.constant 0 : i32
    return %c0_i32, %c0_i32_0 : i32, i32
  }
  func.func @transform_9(%arg0: i32) -> (i32, i32) {
    %c0_i32 = arith.constant 0 : i32
    %c0_i32_0 = arith.constant 0 : i32
    return %arg0, %c0_i32 : i32, i32
  }
}

module attributes {stable_mosaic.version = 11 : i64} {
  func.func @boltznet_kernel(%arg0: i32, %arg1: memref<16x8xf32, #tpu.memory_space<vmem>>, %arg2: memref<8x128xbf16, #tpu.memory_space<vmem>>, %arg3: memref<1x128xf32, #tpu.memory_space<vmem>>, %arg4: memref<128x128xbf16, #tpu.memory_space<vmem>>, %arg5: memref<1x128xf32, #tpu.memory_space<vmem>>, %arg6: memref<128x128xbf16, #tpu.memory_space<vmem>>, %arg7: memref<1x128xf32, #tpu.memory_space<vmem>>, %arg8: memref<128x128xbf16, #tpu.memory_space<vmem>>, %arg9: memref<1x128xf32, #tpu.memory_space<vmem>>, %arg10: memref<16x128xf32, #tpu.memory_space<vmem>>) attributes {dimension_semantics = [#tpu.dimension_semantics<parallel>], iteration_bounds = array<i64: 1>, scalar_prefetch = 0 : i64, scratch_operands = 0 : i64, tpu.core_type = #tpu.core_type<tc>, window_params = [{transform_indices = @transform_0, window_bounds = array<i64: 16, 8>}, {pipeline_mode = #tpu.pipeline_mode<synchronous>, transform_indices = @transform_1, window_bounds = array<i64: 8, 128>}, {pipeline_mode = #tpu.pipeline_mode<synchronous>, transform_indices = @transform_2, window_bounds = array<i64: 1, 128>}, {pipeline_mode = #tpu.pipeline_mode<synchronous>, transform_indices = @transform_3, window_bounds = array<i64: 128, 128>}, {pipeline_mode = #tpu.pipeline_mode<synchronous>, transform_indices = @transform_4, window_bounds = array<i64: 1, 128>}, {pipeline_mode = #tpu.pipeline_mode<synchronous>, transform_indices = @transform_5, window_bounds = array<i64: 128, 128>}, {pipeline_mode = #tpu.pipeline_mode<synchronous>, transform_indices = @transform_6, window_bounds = array<i64: 1, 128>}, {pipeline_mode = #tpu.pipeline_mode<synchronous>, transform_indices = @transform_7, window_bounds = array<i64: 128, 128>}, {pipeline_mode = #tpu.pipeline_mode<synchronous>, transform_indices = @transform_8, window_bounds = array<i64: 1, 128>}, {transform_indices = @transform_9, window_bounds = array<i64: 16, 128>}]} {
    %c0 = arith.constant 0 : index
    %c0_0 = arith.constant 0 : index
    %0 = vector.load %arg1[%c0, %c0_0] : memref<16x8xf32, #tpu.memory_space<vmem>>, vector<16x8xf32>
    %1 = arith.truncf %0 : vector<16x8xf32> to vector<16x8xbf16>
    %c0_1 = arith.constant 0 : index
    %c0_2 = arith.constant 0 : index
    %2 = vector.load %arg2[%c0_1, %c0_2] : memref<8x128xbf16, #tpu.memory_space<vmem>>, vector<8x128xbf16>
    %cst = arith.constant dense<0.000000e+00> : vector<16x128xf32>
    %3 = tpu.matmul %1, %2, %cst {dimension_numbers = #tpu.dot_dimension_numbers<[1], [0], [0], [1], [0, 0, 1, 1], [], []>} : vector<16x8xbf16>, vector<8x128xbf16>, vector<16x128xf32> -> vector<16x128xf32>
    %c0_3 = arith.constant 0 : index
    %c0_4 = arith.constant 0 : index
    %4 = vector.load %arg3[%c0_3, %c0_4] : memref<1x128xf32, #tpu.memory_space<vmem>>, vector<1x128xf32>
    %5 = vector.broadcast %4 : vector<1x128xf32> to vector<16x128xf32>
    %6 = arith.addf %3, %5 : vector<16x128xf32>
    %cst_5 = arith.constant 0.000000e+00 : f32
    %7 = vector.broadcast %cst_5 : f32 to vector<16x128xf32>
    %8 = arith.maximumf %6, %7 : vector<16x128xf32>
    %9 = arith.truncf %8 : vector<16x128xf32> to vector<16x128xbf16>
    %c0_6 = arith.constant 0 : index
    %c0_7 = arith.constant 0 : index
    %10 = vector.load %arg4[%c0_6, %c0_7] : memref<128x128xbf16, #tpu.memory_space<vmem>>, vector<128x128xbf16>
    %cst_8 = arith.constant dense<0.000000e+00> : vector<16x128xf32>
    %11 = tpu.matmul %9, %10, %cst_8 {dimension_numbers = #tpu.dot_dimension_numbers<[1], [0], [0], [1], [0, 0, 1, 1], [], []>} : vector<16x128xbf16>, vector<128x128xbf16>, vector<16x128xf32> -> vector<16x128xf32>
    %c0_9 = arith.constant 0 : index
    %c0_10 = arith.constant 0 : index
    %12 = vector.load %arg5[%c0_9, %c0_10] : memref<1x128xf32, #tpu.memory_space<vmem>>, vector<1x128xf32>
    %13 = vector.broadcast %12 : vector<1x128xf32> to vector<16x128xf32>
    %14 = arith.addf %11, %13 : vector<16x128xf32>
    %15 = math.tanh %14 : vector<16x128xf32>
    %16 = arith.truncf %15 : vector<16x128xf32> to vector<16x128xbf16>
    %c0_11 = arith.constant 0 : index
    %c0_12 = arith.constant 0 : index
    %17 = vector.load %arg6[%c0_11, %c0_12] : memref<128x128xbf16, #tpu.memory_space<vmem>>, vector<128x128xbf16>
    %cst_13 = arith.constant dense<0.000000e+00> : vector<16x128xf32>
    %18 = tpu.matmul %16, %17, %cst_13 {dimension_numbers = #tpu.dot_dimension_numbers<[1], [0], [0], [1], [0, 0, 1, 1], [], []>} : vector<16x128xbf16>, vector<128x128xbf16>, vector<16x128xf32> -> vector<16x128xf32>
    %c0_14 = arith.constant 0 : index
    %c0_15 = arith.constant 0 : index
    %19 = vector.load %arg7[%c0_14, %c0_15] : memref<1x128xf32, #tpu.memory_space<vmem>>, vector<1x128xf32>
    %20 = vector.broadcast %19 : vector<1x128xf32> to vector<16x128xf32>
    %21 = arith.addf %18, %20 : vector<16x128xf32>
    %22 = math.tanh %21 : vector<16x128xf32>
    %23 = arith.truncf %22 : vector<16x128xf32> to vector<16x128xbf16>
    %c0_16 = arith.constant 0 : index
    %c0_17 = arith.constant 0 : index
    %24 = vector.load %arg8[%c0_16, %c0_17] : memref<128x128xbf16, #tpu.memory_space<vmem>>, vector<128x128xbf16>
    %cst_18 = arith.constant dense<0.000000e+00> : vector<16x128xf32>
    %25 = tpu.matmul %23, %24, %cst_18 {dimension_numbers = #tpu.dot_dimension_numbers<[1], [0], [0], [1], [0, 0, 1, 1], [], []>} : vector<16x128xbf16>, vector<128x128xbf16>, vector<16x128xf32> -> vector<16x128xf32>
    %c0_19 = arith.constant 0 : index
    %c0_20 = arith.constant 0 : index
    %26 = vector.load %arg9[%c0_19, %c0_20] : memref<1x128xf32, #tpu.memory_space<vmem>>, vector<1x128xf32>
    %27 = vector.broadcast %26 : vector<1x128xf32> to vector<16x128xf32>
    %28 = arith.addf %25, %27 : vector<16x128xf32>
    %c0_21 = arith.constant 0 : index
    %c0_22 = arith.constant 0 : index
    %29 = vector.load %arg10[%c0_21, %c0_22] : memref<16x128xf32, #tpu.memory_space<vmem>>, vector<16x128xf32>
    tpu.vector_store %arg10[%c0_21, %c0_22], %28 {strides = array<i32>} : memref<16x128xf32, #tpu.memory_space<vmem>>, vector<16x128xf32>,
    return
  }
  func.func @transform_0(%arg0: i32) -> (i32, i32) {
    %c0_i32 = arith.constant 0 : i32
    %c0_i32_0 = arith.constant 0 : i32
    return %arg0, %c0_i32 : i32, i32
  }
  func.func @transform_1(%arg0: i32) -> (i32, i32) {
    %c0_i32 = arith.constant 0 : i32
    %c0_i32_0 = arith.constant 0 : i32
    %c0_i32_1 = arith.constant 0 : i32
    return %c0_i32, %c0_i32_0 : i32, i32
  }
  func.func @transform_2(%arg0: i32) -> (i32, i32) {
    %c0_i32 = arith.constant 0 : i32
    %c0_i32_0 = arith.constant 0 : i32
    %c0_i32_1 = arith.constant 0 : i32
    return %c0_i32, %c0_i32_0 : i32, i32
  }
  func.func @transform_3(%arg0: i32) -> (i32, i32) {
    %c0_i32 = arith.constant 0 : i32
    %c0_i32_0 = arith.constant 0 : i32
    %c0_i32_1 = arith.constant 0 : i32
    return %c0_i32, %c0_i32_0 : i32, i32
  }
  func.func @transform_4(%arg0: i32) -> (i32, i32) {
    %c0_i32 = arith.constant 0 : i32
    %c0_i32_0 = arith.constant 0 : i32
    %c0_i32_1 = arith.constant 0 : i32
    return %c0_i32, %c0_i32_0 : i32, i32
  }
  func.func @transform_5(%arg0: i32) -> (i32, i32) {
    %c0_i32 = arith.constant 0 : i32
    %c0_i32_0 = arith.constant 0 : i32
    %c0_i32_1 = arith.constant 0 : i32
    return %c0_i32, %c0_i32_0 : i32, i32
  }
  func.func @transform_6(%arg0: i32) -> (i32, i32) {
    %c0_i32 = arith.constant 0 : i32
    %c0_i32_0 = arith.constant 0 : i32
    %c0_i32_1 = arith.constant 0 : i32
    return %c0_i32, %c0_i32_0 : i32, i32
  }
  func.func @transform_7(%arg0: i32) -> (i32, i32) {
    %c0_i32 = arith.constant 0 : i32
    %c0_i32_0 = arith.constant 0 : i32
    %c0_i32_1 = arith.constant 0 : i32
    return %c0_i32, %c0_i32_0 : i32, i32
  }
  func.func @transform_8(%arg0: i32) -> (i32, i32) {
    %c0_i32 = arith.constant 0 : i32
    %c0_i32_0 = arith.constant 0 : i32
    %c0_i32_1 = arith.constant 0 : i32
    return %c0_i32, %c0_i32_0 : i32, i32
  }
  func.func @transform_9(%arg0: i32) -> (i32, i32) {
    %c0_i32 = arith.constant 0 : i32
    %c0_i32_0 = arith.constant 0 : i32
    return %arg0, %c0_i32 : i32, i32
  }
}

</mosaic_0001>

<bundles_post_ra>
// kernel: boltznet_forward.1
= control target key start
LH: loop header
LB: loop body
LE: loop exit
PB: predicated region body
PF: predicated region fallthrough
CT: control target
= control target key end

     0   :  { %14 = vsyncpa [#allocation3], 0  ;;  %s897_s0 = inlined_call_operand.vmem [shape: f32[16,8], index: 0, kind: input, shape index: {}]   ;;  %s898_s1 = inlined_call_operand.vmem [shape: bf16[8,128], index: 1, kind: input, shape index: {}]   ;;  %s899_s2 = inlined_call_operand.vmem [shape: f32[1,128], index: 2, kind: input, shape index: {}]   ;;  %s900_s3 = inlined_call_operand.vmem [shape: bf16[128,128], index: 3, kind: input, shape index: {}]   ;;  %s901_s4 = inlined_call_operand.vmem [shape: f32[1,128], index: 4, kind: input, shape index: {}]   ;;  %s902_s5 = inlined_call_operand.hbm [shape: bf16[128,128], index: 5, kind: input, shape index: {}]   ;;  %s903_s6 = inlined_call_operand.vmem [shape: f32[1,128], index: 6, kind: input, shape index: {}]   ;;  %s904_s7 = inlined_call_operand.hbm [shape: bf16[128,128], index: 7, kind: input, shape index: {}]   ;;  %s905_s8 = inlined_call_operand.vmem [shape: f32[1,128], index: 8, kind: input, shape index: {}]   ;;  %s906_s9 = inlined_call_operand.hbm [shape: f32[16,128], index: 9, kind: output, shape index: {}]  }
   0x1   :  { %15 = vsyncpa [#allocation6], 0 }
   0x2   :  { %16 = vsyncpa [#allocation4], 0  ;;  %s724_s30 = smov [#allocation2]   ;;  %s652_s13 = scalar_lea.hbm %s902_s5, 1024 }
   0x3   :  { %s32_s10 = sshll.u32 %s724_s30, 4  ;;  %p653_p0 = scmp.ne.s32.totalorder %s902_s5, %s652_s13  ;;  %s33_s10 = int_to_ptr.vmem [resolvable:$true] %s32_s10 }
   0x4   :  { %p656_p1 = scmp.lt.u32.totalorder %s652_s13, %s902_s5 }
   0x6   :  { %p658_p2 = pnand %p656_p1, %p653_p0 }
   0x8   :  { %661 = shalt.err (!%p658_p2)
}
   0x9   :  { %s662_s18 = scalar_lea.vmem %s33_s10, 1024  ;;  %p667_p4 = scmp.lt.s32.totalorder %s33_s10, %s33_s10 }
   0xa   :  { %p663_p3 = scmp.ne.s32.totalorder %s33_s10, %s662_s18  ;;  %p668_p5 = scmp.lt.s32.totalorder %s662_s18, %s662_s18 }
   0xc   :  { %p669_p6 = por %p668_p5, %p667_p4 }
   0xe   :  { %p670_p7 = pnand %p669_p6, %p663_p3 }
  0x10   :  { %673 = shalt.err (!%p670_p7)
}
  0x11   :  { %s725_s19 = smov 64   ;;  %s726_s20 = smov 4  }
  0x12   :  { %38 = dma.hbm_to_vmem [thread:$0]  %s902_s5, 1024, %s33_s10, [#allocation3], %s725_s19, %s725_s19, %s726_s20  }
  0x13   :  { %s727_s23 = smov [#allocation5]   ;;  %s674_s27 = scalar_lea.hbm %s904_s7, 1024 }
  0x14   :  { %s46_s24 = sshll.u32 %s727_s23, 4  ;;  %p675_p8 = scmp.ne.s32.totalorder %s904_s7, %s674_s27  ;;  %s47_s24 = int_to_ptr.vmem [resolvable:$true] %s46_s24 }
  0x15   :  { %p678_p9 = scmp.lt.u32.totalorder %s674_s27, %s904_s7 }
  0x17   :  { %p680_p10 = pnand %p678_p9, %p675_p8 }
  0x19   :  { %683 = shalt.err (!%p680_p10)
}
  0x1a   :  { %s684_s12 = scalar_lea.vmem %s47_s24, 1024  ;;  %p689_p12 = scmp.lt.s32.totalorder %s47_s24, %s47_s24 }
  0x1b   :  { %p685_p11 = scmp.ne.s32.totalorder %s47_s24, %s684_s12  ;;  %p690_p13 = scmp.lt.s32.totalorder %s684_s12, %s684_s12 }
  0x1d   :  { %p691_p0 = por %p690_p13, %p689_p12 }
  0x1f   :  { %p692_p1 = pnand %p691_p0, %p685_p11 }
  0x21   :  { %695 = shalt.err (!%p692_p1)
}
  0x22   :  { %52 = dma.hbm_to_vmem [thread:$0]  %s904_s7, 1024, %s47_s24, [#allocation6], %s725_s19, %s725_s19, %s726_s20  }
  0x23   :  { %718 = dma.done.wait [#allocation3], 1024  }
  0x24   :  { %719 = vsyncadd [#allocation3], 4294966272 }
  0x25   :  { %720 = dma.done.wait [#allocation6], 1024  }
  0x26   :  { %721 = vsyncadd [#allocation6], 4294966272  ;;  %v728_v0 = vmov 0.0   ;;  %vm729_vm0 = vmmov 0   ;;  %vm77_vm1 = vcmask 1043456   ;;  %v62_v2 = vld [vmem:[%s897_s0] sm:$0xff] }
  0x27   :  { %545 = vmatprep.subr.bf16.mxu0 %v728_v0  ;;  %547 = vmatprep.mubr.msk.bf16.mxu0 %vm729_vm0, %v728_v0  ;;  %v65_v1 = vld [vmem:[%s898_s1] sm:$0xf]  ;;  %v63_v3 = vld [vmem:[%s897_s0 + $0x8] sm:$0xff]  ;;  %vm73_vm2 = vcmask 64512   ;;  %v622_v8 = vld [vmem:[%s900_s3 + $0x10] sm:$0xff]   ;;  %s730_s7 = smov [#allocation7]  }
  0x28   :  { %551 = vmatprep.subr.bf16.mxu1 %v728_v0  ;;  %567 = vmatprep.mubr.msk.bf16.mxu1 %vm729_vm0, %v728_v0  ;;  %v79_v4 = vsel %vm77_vm1, %v65_v1, 0  ;;  %v64_v5 = vpack.c.bf16 %v63_v3, %v62_v2  ;;  %v620_v6 = vld [vmem:[%s900_s3] sm:$0xff]   ;;  %v621_v7 = vld [vmem:[%s900_s3 + $0x8] sm:$0xff]   ;;  %v623_v9 = vld [vmem:[%s900_s3 + $0x18] sm:$0xff]   ;;  %s474_s15 = sshll.u32 %s730_s7, 4  ;;  %s475_s15 = int_to_ptr.vmem [resolvable:$true] %s474_s15 }
  0x29   :  { %546 = vmatpush3.bf16.msra.mxu0 %v79_v4  ;;  %552 = vmatpush3.bf16.msra.mxu1 %v620_v6  ;;  %v624_v10 = vld [vmem:[%s900_s3 + $0x20] sm:$0xff]   ;;  %v625_v11 = vld [vmem:[%s900_s3 + $0x28] sm:$0xff]   ;;  %v626_v12 = vld [vmem:[%s900_s3 + $0x30] sm:$0xff]   ;;  %p701_p3 = scmp.lt.s32.totalorder %s475_s15, %s475_s15 }
  0x2a   :  { %571 = vmatprep.subr.bf16.mxu0 %v728_v0  ;;  %553 = vmatprep.subr.bf16.mxu1 %v728_v0  ;;  %v627_v13 = vld [vmem:[%s900_s3 + $0x38] sm:$0xff]   ;;  %v628_v14 = vld [vmem:[#allocation2] sm:$0xff]   ;;  %v629_v15 = vld [vmem:[#allocation2 + $0x8] sm:$0xff]  }
  0x2b   :  { %v630_v16 = vld [vmem:[#allocation2 + $0x10] sm:$0xff]   ;;  %v631_v17 = vld [vmem:[#allocation2 + $0x18] sm:$0xff]   ;;  %v487_v18 = vld [vmem:[%s899_s2] ss:$0 sm:$0xff] }
  0x2c   :  { %548 = vmatmul.mubr.msk.bf16.vlgmr.msra.gmra.mrb[0].mxu0 %vm73_vm2, %v64_v5  ;;  %v632_v28 = vld [vmem:[#allocation2 + $0x20] sm:$0xff]   ;;  %v633_v29 = vld [vmem:[#allocation2 + $0x28] sm:$0xff]   ;;  %v634_v30 = vld [vmem:[#allocation2 + $0x30] sm:$0xff]  }
  0x2d   :  { %587 = vmatprep.mubr.msk.bf16.mxu0 %vm729_vm0, %v728_v0  ;;  %554 = vmatpush3.bf16.msra.mxu1 %v621_v7  ;;  %v635_v31 = vld [vmem:[#allocation2 + $0x38] sm:$0xff]   ;;  %v636_v32 = vld [vmem:[#allocation5] sm:$0xff]   ;;  %v637_v33 = vld [vmem:[#allocation5 + $0x8] sm:$0xff]  }
  0x2e   :  { %555 = vmatprep.subr.bf16.mxu1 %v728_v0  ;;  %572 = vmatpush3.bf16.msra.mxu0 %v628_v14  ;;  %v638_v34 = vld [vmem:[#allocation5 + $0x10] sm:$0xff]   ;;  %v639_v35 = vld [vmem:[#allocation5 + $0x18] sm:$0xff]   ;;  %v489_v36 = vld [vmem:[%s901_s4] ss:$0 sm:$0xff] }
  0x2f   :  { %573 = vmatprep.subr.bf16.mxu0 %v728_v0  ;;  %v640_v46 = vld [vmem:[#allocation5 + $0x20] sm:$0xff]   ;;  %v641_v47 = vld [vmem:[#allocation5 + $0x28] sm:$0xff]   ;;  %v642_v48 = vld [vmem:[#allocation5 + $0x30] sm:$0xff]  }
  0x30   :  { %v643_v49 = vld [vmem:[#allocation5 + $0x38] sm:$0xff]   ;;  %v498_v50 = vld [vmem:[%s903_s6] ss:$0 sm:$0xff]  ;;  %s696_s6 = scalar_lea.vmem %s475_s15, 256 }
  0x31   :  { %556 = vmatpush3.bf16.msra.mxu1 %v622_v8  ;;  %v507_v60 = vld [vmem:[%s905_s8] ss:$0 sm:$0xff]  ;;  %p697_p2 = scmp.ne.s32.totalorder %s475_s15, %s696_s6  ;;  %p702_p4 = scmp.lt.s32.totalorder %s696_s6, %s696_s6 }
  0x32   :  { %557 = vmatprep.subr.bf16.mxu1 %v728_v0  ;;  %574 = vmatpush3.bf16.msra.mxu0 %v629_v15 }
  0x33   :  { %575 = vmatprep.subr.bf16.mxu0 %v728_v0  ;;  %p703_p5 = por %p702_p4, %p701_p3 }
  0x35   :  { %558 = vmatpush3.bf16.msra.mxu1 %v623_v9  ;;  %p704_p6 = pnand %p703_p5, %p697_p2 }
  0x36   :  { %559 = vmatprep.subr.bf16.mxu1 %v728_v0  ;;  %576 = vmatpush3.bf16.msra.mxu0 %v630_v16 }
  0x37   :  { %577 = vmatprep.subr.bf16.mxu0 %v728_v0 }
  0x39   :  { %560 = vmatpush3.bf16.msra.mxu1 %v624_v10 }
  0x3a   :  { %561 = vmatprep.subr.bf16.mxu1 %v728_v0  ;;  %578 = vmatpush3.bf16.msra.mxu0 %v631_v17 }
  0x3b   :  { %579 = vmatprep.subr.bf16.mxu0 %v728_v0 }
  0x3d   :  { %562 = vmatpush3.bf16.msra.mxu1 %v625_v11 }
  0x3e   :  { %563 = vmatprep.subr.bf16.mxu1 %v728_v0  ;;  %580 = vmatpush3.bf16.msra.mxu0 %v632_v28 }
  0x3f   :  { %581 = vmatprep.subr.bf16.mxu0 %v728_v0 }
  0x41   :  { %564 = vmatpush3.bf16.msra.mxu1 %v626_v12 }
  0x42   :  { %565 = vmatprep.subr.bf16.mxu1 %v728_v0  ;;  %582 = vmatpush3.bf16.msra.mxu0 %v633_v29 }
  0x43   :  { %583 = vmatprep.subr.bf16.mxu0 %v728_v0 }
  0x45   :  { %566 = vmatpush3.bf16.msra.mxu1 %v627_v13 }
  0x46   :  { %591 = vmatprep.subr.bf16.mxu1 %v728_v0  ;;  %584 = vmatpush3.bf16.msra.mxu0 %v634_v30 }
  0x47   :  { %585 = vmatprep.subr.bf16.mxu0 %v728_v0 }
  0x4a   :  { %586 = vmatpush3.bf16.msra.mxu0 %v635_v31 }
  0xff   :  { %v115_v19 = vpop.f32.mrb[0].mxu0 }
 0x100   :  { %v116_v20 = vadd.f32 %v487_v18, %v115_v19  ;;  %v549_v21 = vpop.f32.mrb[1].mxu0 }
 0x101   :  { %v118_v22 = vpop.f32.mrb[2].mxu0 }
 0x102   :  { %v119_v23 = vadd.f32 %v487_v18, %v118_v22  ;;  %v550_v24 = vpop.f32.mrb[3].mxu0  ;;  %v122_v25 = vmax.f32 %v116_v20, 0.0 }
 0x104   :  { %v123_v26 = vmax.f32 %v119_v23, 0.0 }
 0x106   :  { %v124_v27 = vpack.c.bf16 %v123_v26, %v122_v25 }
 0x108   :  { %568 = vmatmul.mubr.bf16.vlgmr.msra.gmra.mrb[0].mxu1 %v124_v27 }
 0x109   :  { %607 = vmatprep.mubr.msk.bf16.mxu1 %vm729_vm0, %v728_v0  ;;  %592 = vmatpush3.bf16.msra.mxu1 %v636_v32 }
 0x10a   :  { %593 = vmatprep.subr.bf16.mxu1 %v728_v0 }
 0x10d   :  { %594 = vmatpush3.bf16.msra.mxu1 %v637_v33 }
 0x10e   :  { %595 = vmatprep.subr.bf16.mxu1 %v728_v0 }
 0x111   :  { %596 = vmatpush3.bf16.msra.mxu1 %v638_v34 }
 0x112   :  { %597 = vmatprep.subr.bf16.mxu1 %v728_v0 }
 0x115   :  { %598 = vmatpush3.bf16.msra.mxu1 %v639_v35 }
 0x116   :  { %599 = vmatprep.subr.bf16.mxu1 %v728_v0 }
 0x119   :  { %600 = vmatpush3.bf16.msra.mxu1 %v640_v46 }
 0x11a   :  { %601 = vmatprep.subr.bf16.mxu1 %v728_v0 }
 0x11d   :  { %602 = vmatpush3.bf16.msra.mxu1 %v641_v47 }
 0x11e   :  { %603 = vmatprep.subr.bf16.mxu1 %v728_v0 }
 0x121   :  { %604 = vmatpush3.bf16.msra.mxu1 %v642_v48 }
 0x122   :  { %605 = vmatprep.subr.bf16.mxu1 %v728_v0 }
 0x125   :  { %606 = vmatpush3.bf16.msra.mxu1 %v643_v49 }
 0x1db   :  { %v230_v37 = vpop.f32.mrb[0].mxu1 }
 0x1dc   :  { %v231_v38 = vadd.f32 %v489_v36, %v230_v37  ;;  %v569_v39 = vpop.f32.mrb[1].mxu1 }
 0x1dd   :  { %v233_v40 = vpop.f32.mrb[2].mxu1 }
 0x1de   :  { %v234_v41 = vadd.f32 %v489_v36, %v233_v40  ;;  %v570_v42 = vpop.f32.mrb[3].mxu1  ;;  %644 = vtanh.f32 %v231_v38 }
 0x1e0   :  { %646 = vtanh.f32 %v234_v41 }
 0x1e8   :  { %v645_v43 = vpop.eup %644 }
 0x1ea   :  { %v647_v44 = vpop.eup %646 }
 0x1eb   :  { %v239_v45 = vpack.c.bf16 %v647_v44, %v645_v43 }
 0x1ed   :  { %588 = vmatmul.mubr.bf16.vlgmr.msra.gmra.mrb[4].mxu0 %v239_v45 }
 0x2c0   :  { %v345_v51 = vpop.f32.mrb[4].mxu0 }
 0x2c1   :  { %v346_v52 = vadd.f32 %v498_v50, %v345_v51  ;;  %v589_v53 = vpop.f32.mrb[5].mxu0 }
 0x2c2   :  { %v348_v54 = vpop.f32.mrb[6].mxu0 }
 0x2c3   :  { %v349_v55 = vadd.f32 %v498_v50, %v348_v54  ;;  %v590_v56 = vpop.f32.mrb[7].mxu0  ;;  %648 = vtanh.f32 %v346_v52 }
 0x2c5   :  { %650 = vtanh.f32 %v349_v55 }
 0x2cd   :  { %v649_v57 = vpop.eup %648 }
 0x2cf   :  { %v651_v58 = vpop.eup %650 }
 0x2d0   :  { %v354_v59 = vpack.c.bf16 %v651_v58, %v649_v57 }
 0x2d2   :  { %608 = vmatmul.mubr.bf16.vlgmr.msra.gmra.mrb[4].mxu1 %v354_v59 }
 0x3a5   :  { %v460_v61 = vpop.f32.mrb[4].mxu1 }
 0x3a6   :  { %v461_v62 = vadd.f32 %v507_v60, %v460_v61  ;;  %v609_v63 = vpop.f32.mrb[5].mxu1 }
 0x3a7   :  { %v463_v0 = vpop.f32.mrb[6].mxu1 }
 0x3a8   :  { %467 = vst [vmem:[#allocation7] sm:$0xff] %v461_v62  ;;  %v464_v1 = vadd.f32 %v507_v60, %v463_v0  ;;  %v610_v2 = vpop.f32.mrb[7].mxu1 }
 0x3aa   :  { %468 = vst [vmem:[#allocation7 + $0x8] sm:$0xff] %v464_v1 }
 0x3ab   :  { %707 = shalt.err (!%p704_p6)
}
 0x3ac   :  { %s708_s17 = scalar_lea.hbm %s906_s9, 256 }
 0x3ad   :  { %p709_p7 = scmp.ne.s32.totalorder %s906_s9, %s708_s17  ;;  %p712_p8 = scmp.lt.u32.totalorder %s708_s17, %s906_s9 }
 0x3af   :  { %p714_p9 = pnand %p712_p8, %p709_p7 }
 0x3b1   :  { %717 = shalt.err (!%p714_p9)
}
 0x3b2   :  { %s731_s0 = smov 128   ;;  %s732_s1 = smov 8  }
 0x3b3   :  { %480 = dma.vmem_to_hbm [thread:$0]  %s475_s15, 256, %s906_s9, [#allocation4], %s731_s0, %s731_s0, %s732_s1  }
 0x3b4   :  { %722 = dma.done.wait [#allocation4], 256  }
 0x3b5   :  { %723 = vsyncadd [#allocation4], 4294967040 }
 0x3b6   :  { %484 = vsyncpa [#allocation3], 1 }
 0x3b7   :  { %485 = vsyncpa [#allocation6], 1 }
 0x3b8   :  { %486 = vsyncpa [#allocation4], 1 }

// kernel: boltznet_forward.1
= control target key start
LH: loop header
LB: loop body
LE: loop exit
PB: predicated region body
PF: predicated region fallthrough
CT: control target
= control target key end

     0   :  { %14 = vsyncpa [#allocation3], 0  ;;  %s897_s0 = inlined_call_operand.vmem [shape: f32[16,8], index: 0, kind: input, shape index: {}]   ;;  %s898_s1 = inlined_call_operand.vmem [shape: bf16[8,128], index: 1, kind: input, shape index: {}]   ;;  %s899_s2 = inlined_call_operand.vmem [shape: f32[1,128], index: 2, kind: input, shape index: {}]   ;;  %s900_s3 = inlined_call_operand.vmem [shape: bf16[128,128], index: 3, kind: input, shape index: {}]   ;;  %s901_s4 = inlined_call_operand.vmem [shape: f32[1,128], index: 4, kind: input, shape index: {}]   ;;  %s902_s5 = inlined_call_operand.hbm [shape: bf16[128,128], index: 5, kind: input, shape index: {}]   ;;  %s903_s6 = inlined_call_operand.vmem [shape: f32[1,128], index: 6, kind: input, shape index: {}]   ;;  %s904_s7 = inlined_call_operand.hbm [shape: bf16[128,128], index: 7, kind: input, shape index: {}]   ;;  %s905_s8 = inlined_call_operand.vmem [shape: f32[1,128], index: 8, kind: input, shape index: {}]   ;;  %s906_s9 = inlined_call_operand.hbm [shape: f32[16,128], index: 9, kind: output, shape index: {}]  }
   0x1   :  { %15 = vsyncpa [#allocation6], 0 }
   0x2   :  { %16 = vsyncpa [#allocation4], 0  ;;  %s724_s30 = smov [#allocation2]   ;;  %s652_s13 = scalar_lea.hbm %s902_s5, 1024 }
   0x3   :  { %s32_s10 = sshll.u32 %s724_s30, 4  ;;  %p653_p0 = scmp.ne.s32.totalorder %s902_s5, %s652_s13  ;;  %s33_s10 = int_to_ptr.vmem [resolvable:$true] %s32_s10 }
   0x4   :  { %p656_p1 = scmp.lt.u32.totalorder %s652_s13, %s902_s5 }
   0x6   :  { %p658_p2 = pnand %p656_p1, %p653_p0 }
   0x8   :  { %661 = shalt.err (!%p658_p2)
}
   0x9   :  { %s662_s18 = scalar_lea.vmem %s33_s10, 1024  ;;  %p667_p4 = scmp.lt.s32.totalorder %s33_s10, %s33_s10 }
   0xa   :  { %p663_p3 = scmp.ne.s32.totalorder %s33_s10, %s662_s18  ;;  %p668_p5 = scmp.lt.s32.totalorder %s662_s18, %s662_s18 }
   0xc   :  { %p669_p6 = por %p668_p5, %p667_p4 }
   0xe   :  { %p670_p7 = pnand %p669_p6, %p663_p3 }
  0x10   :  { %673 = shalt.err (!%p670_p7)
}
  0x11   :  { %s725_s19 = smov 64   ;;  %s726_s20 = smov 4  }
  0x12   :  { %38 = dma.hbm_to_vmem [thread:$0]  %s902_s5, 1024, %s33_s10, [#allocation3], %s725_s19, %s725_s19, %s726_s20  }
  0x13   :  { %s727_s23 = smov [#allocation5]   ;;  %s674_s27 = scalar_lea.hbm %s904_s7, 1024 }
  0x14   :  { %s46_s24 = sshll.u32 %s727_s23, 4  ;;  %p675_p8 = scmp.ne.s32.totalorder %s904_s7, %s674_s27  ;;  %s47_s24 = int_to_ptr.vmem [resolvable:$true] %s46_s24 }
  0x15   :  { %p678_p9 = scmp.lt.u32.totalorder %s674_s27, %s904_s7 }
  0x17   :  { %p680_p10 = pnand %p678_p9, %p675_p8 }
  0x19   :  { %683 = shalt.err (!%p680_p10)
}
  0x1a   :  { %s684_s12 = scalar_lea.vmem %s47_s24, 1024  ;;  %p689_p12 = scmp.lt.s32.totalorder %s47_s24, %s47_s24 }
  0x1b   :  { %p685_p11 = scmp.ne.s32.totalorder %s47_s24, %s684_s12  ;;  %p690_p13 = scmp.lt.s32.totalorder %s684_s12, %s684_s12 }
  0x1d   :  { %p691_p0 = por %p690_p13, %p689_p12 }
  0x1f   :  { %p692_p1 = pnand %p691_p0, %p685_p11 }
  0x21   :  { %695 = shalt.err (!%p692_p1)
}
  0x22   :  { %52 = dma.hbm_to_vmem [thread:$0]  %s904_s7, 1024, %s47_s24, [#allocation6], %s725_s19, %s725_s19, %s726_s20  }
  0x23   :  { %718 = dma.done.wait [#allocation3], 1024  }
  0x24   :  { %719 = vsyncadd [#allocation3], 4294966272 }
  0x25   :  { %720 = dma.done.wait [#allocation6], 1024  }
  0x26   :  { %721 = vsyncadd [#allocation6], 4294966272  ;;  %v728_v0 = vmov 0.0   ;;  %vm729_vm0 = vmmov 0   ;;  %vm77_vm1 = vcmask 1043456   ;;  %v62_v2 = vld [vmem:[%s897_s0] sm:$0xff] }
  0x27   :  { %545 = vmatprep.subr.bf16.mxu0 %v728_v0  ;;  %547 = vmatprep.mubr.msk.bf16.mxu0 %vm729_vm0, %v728_v0  ;;  %v65_v1 = vld [vmem:[%s898_s1] sm:$0xf]  ;;  %v63_v3 = vld [vmem:[%s897_s0 + $0x8] sm:$0xff]  ;;  %vm73_vm2 = vcmask 64512   ;;  %v622_v8 = vld [vmem:[%s900_s3 + $0x10] sm:$0xff]   ;;  %s730_s7 = smov [#allocation7]  }
  0x28   :  { %551 = vmatprep.subr.bf16.mxu1 %v728_v0  ;;  %567 = vmatprep.mubr.msk.bf16.mxu1 %vm729_vm0, %v728_v0  ;;  %v79_v4 = vsel %vm77_vm1, %v65_v1, 0  ;;  %v64_v5 = vpack.c.bf16 %v63_v3, %v62_v2  ;;  %v620_v6 = vld [vmem:[%s900_s3] sm:$0xff]   ;;  %v621_v7 = vld [vmem:[%s900_s3 + $0x8] sm:$0xff]   ;;  %v623_v9 = vld [vmem:[%s900_s3 + $0x18] sm:$0xff]   ;;  %s474_s15 = sshll.u32 %s730_s7, 4  ;;  %s475_s15 = int_to_ptr.vmem [resolvable:$true] %s474_s15 }
  0x29   :  { %546 = vmatpush3.bf16.msra.mxu0 %v79_v4  ;;  %552 = vmatpush3.bf16.msra.mxu1 %v620_v6  ;;  %v624_v10 = vld [vmem:[%s900_s3 + $0x20] sm:$0xff]   ;;  %v625_v11 = vld [vmem:[%s900_s3 + $0x28] sm:$0xff]   ;;  %v626_v12 = vld [vmem:[%s900_s3 + $0x30] sm:$0xff]   ;;  %p701_p3 = scmp.lt.s32.totalorder %s475_s15, %s475_s15 }
  0x2a   :  { %571 = vmatprep.subr.bf16.mxu0 %v728_v0  ;;  %553 = vmatprep.subr.bf16.mxu1 %v728_v0  ;;  %v627_v13 = vld [vmem:[%s900_s3 + $0x38] sm:$0xff]   ;;  %v628_v14 = vld [vmem:[#allocation2] sm:$0xff]   ;;  %v629_v15 = vld [vmem:[#allocation2 + $0x8] sm:$0xff]  }
  0x2b   :  { %v630_v16 = vld [vmem:[#allocation2 + $0x10] sm:$0xff]   ;;  %v631_v17 = vld [vmem:[#allocation2 + $0x18] sm:$0xff]   ;;  %v487_v18 = vld [vmem:[%s899_s2] ss:$0 sm:$0xff] }
  0x2c   :  { %548 = vmatmul.mubr.msk.bf16.vlgmr.msra.gmra.mrb[0].mxu0 %vm73_vm2, %v64_v5  ;;  %v632_v28 = vld [vmem:[#allocation2 + $0x20] sm:$0xff]   ;;  %v633_v29 = vld [vmem:[#allocation2 + $0x28] sm:$0xff]   ;;  %v634_v30 = vld [vmem:[#allocation2 + $0x30] sm:$0xff]  }
  0x2d   :  { %587 = vmatprep.mubr.msk.bf16.mxu0 %vm729_vm0, %v728_v0  ;;  %554 = vmatpush3.bf16.msra.mxu1 %v621_v7  ;;  %v635_v31 = vld [vmem:[#allocation2 + $0x38] sm:$0xff]   ;;  %v636_v32 = vld [vmem:[#allocation5] sm:$0xff]   ;;  %v637_v33 = vld [vmem:[#allocation5 + $0x8] sm:$0xff]  }
  0x2e   :  { %555 = vmatprep.subr.bf16.mxu1 %v728_v0  ;;  %572 = vmatpush3.bf16.msra.mxu0 %v628_v14  ;;  %v638_v34 = vld [vmem:[#allocation5 + $0x10] sm:$0xff]   ;;  %v639_v35 = vld [vmem:[#allocation5 + $0x18] sm:$0xff]   ;;  %v489_v36 = vld [vmem:[%s901_s4] ss:$0 sm:$0xff] }
  0x2f   :  { %573 = vmatprep.subr.bf16.mxu0 %v728_v0  ;;  %v640_v46 = vld [vmem:[#allocation5 + $0x20] sm:$0xff]   ;;  %v641_v47 = vld [vmem:[#allocation5 + $0x28] sm:$0xff]   ;;  %v642_v48 = vld [vmem:[#allocation5 + $0x30] sm:$0xff]  }
  0x30   :  { %v643_v49 = vld [vmem:[#allocation5 + $0x38] sm:$0xff]   ;;  %v498_v50 = vld [vmem:[%s903_s6] ss:$0 sm:$0xff]  ;;  %s696_s6 = scalar_lea.vmem %s475_s15, 256 }
  0x31   :  { %556 = vmatpush3.bf16.msra.mxu1 %v622_v8  ;;  %v507_v60 = vld [vmem:[%s905_s8] ss:$0 sm:$0xff]  ;;  %p697_p2 = scmp.ne.s32.totalorder %s475_s15, %s696_s6  ;;  %p702_p4 = scmp.lt.s32.totalorder %s696_s6, %s696_s6 }
  0x32   :  { %557 = vmatprep.subr.bf16.mxu1 %v728_v0  ;;  %574 = vmatpush3.bf16.msra.mxu0 %v629_v15 }
  0x33   :  { %575 = vmatprep.subr.bf16.mxu0 %v728_v0  ;;  %p703_p5 = por %p702_p4, %p701_p3 }
  0x35   :  { %558 = vmatpush3.bf16.msra.mxu1 %v623_v9  ;;  %p704_p6 = pnand %p703_p5, %p697_p2 }
  0x36   :  { %559 = vmatprep.subr.bf16.mxu1 %v728_v0  ;;  %576 = vmatpush3.bf16.msra.mxu0 %v630_v16 }
  0x37   :  { %577 = vmatprep.subr.bf16.mxu0 %v728_v0 }
  0x39   :  { %560 = vmatpush3.bf16.msra.mxu1 %v624_v10 }
  0x3a   :  { %561 = vmatprep.subr.bf16.mxu1 %v728_v0  ;;  %578 = vmatpush3.bf16.msra.mxu0 %v631_v17 }
  0x3b   :  { %579 = vmatprep.subr.bf16.mxu0 %v728_v0 }
  0x3d   :  { %562 = vmatpush3.bf16.msra.mxu1 %v625_v11 }
  0x3e   :  { %563 = vmatprep.subr.bf16.mxu1 %v728_v0  ;;  %580 = vmatpush3.bf16.msra.mxu0 %v632_v28 }
  0x3f   :  { %581 = vmatprep.subr.bf16.mxu0 %v728_v0 }
  0x41   :  { %564 = vmatpush3.bf16.msra.mxu1 %v626_v12 }
  0x42   :  { %565 = vmatprep.subr.bf16.mxu1 %v728_v0  ;;  %582 = vmatpush3.bf16.msra.mxu0 %v633_v29 }
  0x43   :  { %583 = vmatprep.subr.bf16.mxu0 %v728_v0 }
  0x45   :  { %566 = vmatpush3.bf16.msra.mxu1 %v627_v13 }
  0x46   :  { %591 = vmatprep.subr.bf16.mxu1 %v728_v0  ;;  %584 = vmatpush3.bf16.msra.mxu0 %v634_v30 }
  0x47   :  { %585 = vmatprep.subr.bf16.mxu0 %v728_v0 }
  0x4a   :  { %586 = vmatpush3.bf16.msra.mxu0 %v635_v31 }
  0xff   :  { %v115_v19 = vpop.f32.mrb[0].mxu0 }
 0x100   :  { %v116_v20 = vadd.f32 %v487_v18, %v115_v19  ;;  %v549_v21 = vpop.f32.mrb[1].mxu0 }
 0x101   :  { %v118_v22 = vpop.f32.mrb[2].mxu0 }
 0x102   :  { %v119_v23 = vadd.f32 %v487_v18, %v118_v22  ;;  %v550_v24 = vpop.f32.mrb[3].mxu0  ;;  %v122_v25 = vmax.f32 %v116_v20, 0.0 }
 0x104   :  { %v123_v26 = vmax.f32 %v119_v23, 0.0 }
 0x106   :  { %v124_v27 = vpack.c.bf16 %v123_v26, %v122_v25 }
 0x108   :  { %568 = vmatmul.mubr.bf16.vlgmr.msra.gmra.mrb[0].mxu1 %v124_v27 }
 0x109   :  { %607 = vmatprep.mubr.msk.bf16.mxu1 %vm729_vm0, %v728_v0  ;;  %592 = vmatpush3.bf16.msra.mxu1 %v636_v32 }
 0x10a   :  { %593 = vmatprep.subr.bf16.mxu1 %v728_v0 }
 0x10d   :  { %594 = vmatpush3.bf16.msra.mxu1 %v637_v33 }
 0x10e   :  { %595 = vmatprep.subr.bf16.mxu1 %v728_v0 }
 0x111   :  { %596 = vmatpush3.bf16.msra.mxu1 %v638_v34 }
 0x112   :  { %597 = vmatprep.subr.bf16.mxu1 %v728_v0 }
 0x115   :  { %598 = vmatpush3.bf16.msra.mxu1 %v639_v35 }
 0x116   :  { %599 = vmatprep.subr.bf16.mxu1 %v728_v0 }
 0x119   :  { %600 = vmatpush3.bf16.msra.mxu1 %v640_v46 }
 0x11a   :  { %601 = vmatprep.subr.bf16.mxu1 %v728_v0 }
 0x11d   :  { %602 = vmatpush3.bf16.msra.mxu1 %v641_v47 }
 0x11e   :  { %603 = vmatprep.subr.bf16.mxu1 %v728_v0 }
 0x121   :  { %604 = vmatpush3.bf16.msra.mxu1 %v642_v48 }
 0x122   :  { %605 = vmatprep.subr.bf16.mxu1 %v728_v0 }
 0x125   :  { %606 = vmatpush3.bf16.msra.mxu1 %v643_v49 }
 0x1db   :  { %v230_v37 = vpop.f32.mrb[0].mxu1 }
 0x1dc   :  { %v231_v38 = vadd.f32 %v489_v36, %v230_v37  ;;  %v569_v39 = vpop.f32.mrb[1].mxu1 }
 0x1dd   :  { %v233_v40 = vpop.f32.mrb[2].mxu1 }
 0x1de   :  { %v234_v41 = vadd.f32 %v489_v36, %v233_v40  ;;  %v570_v42 = vpop.f32.mrb[3].mxu1  ;;  %644 = vtanh.f32 %v231_v38 }
 0x1e0   :  { %646 = vtanh.f32 %v234_v41 }
 0x1e8   :  { %v645_v43 = vpop.eup %644 }
 0x1ea   :  { %v647_v44 = vpop.eup %646 }
 0x1eb   :  { %v239_v45 = vpack.c.bf16 %v647_v44, %v645_v43 }
 0x1ed   :  { %588 = vmatmul.mubr.bf16.vlgmr.msra.gmra.mrb[4].mxu0 %v239_v45 }
 0x2c0   :  { %v345_v51 = vpop.f32.mrb[4].mxu0 }
 0x2c1   :  { %v346_v52 = vadd.f32 %v498_v50, %v345_v51  ;;  %v589_v53 = vpop.f32.mrb[5].mxu0 }
 0x2c2   :  { %v348_v54 = vpop.f32.mrb[6].mxu0 }
 0x2c3   :  { %v349_v55 = vadd.f32 %v498_v50, %v348_v54  ;;  %v590_v56 = vpop.f32.mrb[7].mxu0  ;;  %648 = vtanh.f32 %v346_v52 }
 0x2c5   :  { %650 = vtanh.f32 %v349_v55 }
 0x2cd   :  { %v649_v57 = vpop.eup %648 }
 0x2cf   :  { %v651_v58 = vpop.eup %650 }
 0x2d0   :  { %v354_v59 = vpack.c.bf16 %v651_v58, %v649_v57 }
 0x2d2   :  { %608 = vmatmul.mubr.bf16.vlgmr.msra.gmra.mrb[4].mxu1 %v354_v59 }
 0x3a5   :  { %v460_v61 = vpop.f32.mrb[4].mxu1 }
 0x3a6   :  { %v461_v62 = vadd.f32 %v507_v60, %v460_v61  ;;  %v609_v63 = vpop.f32.mrb[5].mxu1 }
 0x3a7   :  { %v463_v0 = vpop.f32.mrb[6].mxu1 }
 0x3a8   :  { %467 = vst [vmem:[#allocation7] sm:$0xff] %v461_v62  ;;  %v464_v1 = vadd.f32 %v507_v60, %v463_v0  ;;  %v610_v2 = vpop.f32.mrb[7].mxu1 }
 0x3aa   :  { %468 = vst [vmem:[#allocation7 + $0x8] sm:$0xff] %v464_v1 }
 0x3ab   :  { %707 = shalt.err (!%p704_p6)
}
 0x3ac   :  { %s708_s17 = scalar_lea.hbm %s906_s9, 256 }
 0x3ad   :  { %p709_p7 = scmp.ne.s32.totalorder %s906_s9, %s708_s17  ;;  %p712_p8 = scmp.lt.u32.totalorder %s708_s17, %s906_s9 }
 0x3af   :  { %p714_p9 = pnand %p712_p8, %p709_p7 }
 0x3b1   :  { %717 = shalt.err (!%p714_p9)
}
 0x3b2   :  { %s731_s0 = smov 128   ;;  %s732_s1 = smov 8  }
 0x3b3   :  { %480 = dma.vmem_to_hbm [thread:$0]  %s475_s15, 256, %s906_s9, [#allocation4], %s731_s0, %s731_s0, %s732_s1  }
 0x3b4   :  { %722 = dma.done.wait [#allocation4], 256  }
 0x3b5   :  { %723 = vsyncadd [#allocation4], 4294967040 }
 0x3b6   :  { %484 = vsyncpa [#allocation3], 1 }
 0x3b7   :  { %485 = vsyncpa [#allocation6], 1 }
 0x3b8   :  { %486 = vsyncpa [#allocation4], 1 }

</bundles_post_ra>
